<compile_context>
chip_gen: v6e
topology: v6e:2x2x1
jax: 0.10.0
libtpu: 0.0.40
codegen_flags: <defaults>
</compile_context>

<pallas_src>
import functools
import math

import jax
import jax.numpy as jnp
from jax.experimental import pallas as pl
from jax.experimental.pallas import tpu as pltpu

# Synthetic stand-in for C.MLP_CFGS
MLP_CFGS = {
    "1_hidden_layer": [64],
    "2_hidden_layer": [64, 32],
    "3_hidden_layer": [128, 64, 32],
}


def _round_up(x, m):
    return ((x + m - 1) // m) * m


def _pick_batch_tile(batch, tile_b):
    """Choose (tile, padded_batch).

    Guarantees:
      * tile is a multiple of 8 (f32 sublane tile) and either equals the padded
        batch (single tile) or is a multiple of 128 (lane-legal (1, tile) output).
      * padded_batch % tile == 0, and a padding copy is only needed when no
        suitable divisor of `batch` exists.
    """
    b_al = _round_up(batch, 8)
    cap = max(128, (tile_b // 128) * 128)
    if b_al <= cap:
        return b_al, b_al                       # single tile == full (padded) batch
    if batch % cap == 0:
        return cap, batch                       # tile divides batch -> no pad copy
    # Look for a lane-legal divisor of the batch (down to cap/4) before padding.
    for cand in range(cap, cap // 4 - 1, -128):
        if batch % cand == 0:
            return cand, batch                  # divisor found -> no pad copy
    return cap, _round_up(batch, cap)           # accept a (small) ragged-tail pad


def _mlp_kernel(x_ref, w1_ref, b1_ref, w2_ref, b2_ref, wo_ref, bo_ref, o_ref):
    """One batch tile: tanh(x@W1+b1) -> tanh(.@W2+b2) -> .@wo+bo, lane-dense out."""
    # x arrives as f32 (single HBM read of the raw input); cast to bf16 on the VPU
    # right before the MXU -- no standalone convert pass in HBM.
    x = x_ref[...].astype(jnp.bfloat16)
    # Layer 1: bf16 MXU matmul, f32 accumulation; bias + tanh in f32 (EUP).
    h = jnp.dot(x, w1_ref[...], preferred_element_type=jnp.float32)
    h = jnp.tanh(h + b1_ref[...])
    # Layer 2.
    h = jnp.dot(h.astype(jnp.bfloat16), w2_ref[...],
                preferred_element_type=jnp.float32)
    h = jnp.tanh(h + b2_ref[...])
    # Output layer (H2 -> 1), emitted lane-dense as (1, TILE_B): contract the
    # (1, H2) weight row with h's feature axis so the batch lands on the lane axis
    # (avoids a width-1 output column of masked vst.msk stores).
    o = jax.lax.dot_general(
        wo_ref[...], h.astype(jnp.bfloat16),
        dimension_numbers=(((1,), (1,)), ((), ())),
        preferred_element_type=jnp.float32,
    )
    o_ref[...] = (o + bo_ref[...]).astype(o_ref.dtype)


@functools.partial(jax.jit, static_argnames=("tile_b", "core_parallel"))
def mlp_forward(x_nchw, params, *, tile_b=2048, core_parallel=False):
    """x_nchw: (B, C, H, W) float32. params: dict of (in,out)-layout weights."""
    B = x_nchw.shape[0]
    feat = math.prod(x_nchw.shape[1:])
    # torch.flatten(x, start_dim=1) -- metadata-only reshape, stays f32 in HBM.
    x = x_nchw.reshape(B, feat)

    tb, b_pad = _pick_batch_tile(B, tile_b)
    if b_pad != B:
        # Only hit for a ragged tail no divisor covers (or tiny B -> sublane pad).
        x = jnp.pad(x, ((0, b_pad - B), (0, 0)))
    n_tiles = b_pad // tb

    # Parameters are ~140 KB total: casting them to bf16 here is negligible and
    # they stay resident in VMEM across all grid steps.
    w1 = params["w1"].astype(jnp.bfloat16)
    w2 = params["w2"].astype(jnp.bfloat16)
    wo = params["wo"].astype(jnp.bfloat16)          # (1, H2) weight row
    b1, b2, bo = params["b1"], params["b2"], params["bo"]
    h1, h2 = w1.shape[1], w2.shape[1]

    def resident(shape):
        # Constant block index => parameter stays in VMEM across all grid steps.
        return pl.BlockSpec(shape, lambda i: (0,) * len(shape))

    # VMEM footprint: double-buffered f32 input tile + resident params + tiny out.
    in_buf_bytes = 2 * tb * feat * 4
    out_buf_bytes = 2 * 8 * tb * 4
    param_bytes = (w1.size + w2.size + wo.size) * 2 + (b1.size + b2.size + bo.size) * 4
    vmem_limit = int(min(64 << 20, max(32 << 20, in_buf_bytes + out_buf_bytes
                                       + param_bytes + (8 << 20))))

    # Advisory cost: lets XLA overlap the surrounding reshape/slice with the kernel.
    cost = pl.CostEstimate(
        flops=int(2 * b_pad * (feat * h1 + h1 * h2 + h2)),
        transcendentals=int(b_pad * (h1 + h2)),
        bytes_accessed=int(b_pad * feat * 4 + param_bytes + b_pad * 4),
    )

    # On v7x, core_parallel=True splits the batch tiles across the two TensorCores.
    sem = pltpu.CORE_PARALLEL if core_parallel else pltpu.PARALLEL

    out_t = pl.pallas_call(
        _mlp_kernel,
        out_shape=jax.ShapeDtypeStruct((1, b_pad), jnp.float32),
        grid_spec=pltpu.PrefetchScalarGridSpec(
            num_scalar_prefetch=0,
            grid=(n_tiles,),
            in_specs=[
                # Streamed + double-buffered f32 input tile (raise to pl.Buffered(3)
                # on v7x if DMA issue latency ever shows up in the trace).
                pl.BlockSpec((tb, feat), lambda i: (i, 0)),
                resident(w1.shape),
                resident(b1.shape),
                resident(w2.shape),
                resident(b2.shape),
                resident(wo.shape),
                resident(bo.shape),
            ],
            # Lane-dense output: batch sits on the 128-lane axis.
            out_specs=pl.BlockSpec((1, tb), lambda i: (0, i)),
        ),
        compiler_params=pltpu.CompilerParams(
            dimension_semantics=(sem,),
            vmem_limit_bytes=vmem_limit,
        ),
        cost_estimate=cost,
    )(x, w1, b1, w2, b2, wo, bo)

    # Back to the module's (B, 1) layout, dropping any batch padding.
    return out_t[0, :B][:, None]


def init_params(key, in_features, cfg_name="2_hidden_layer"):
    """f32 master params mimicking PyTorch Linear default init (U[-1/sqrt(fan_in), +])."""
    cfg = MLP_CFGS[cfg_name]
    assert len(cfg) == 2, "This fused kernel is specialized to the 2-hidden-layer cfg."
    h1, h2 = cfg

    def linear(k, fan_in, fan_out):
        kw, kb = jax.random.split(k)
        bound = 1.0 / math.sqrt(fan_in)
        # stored already transposed: (in, out)
        w = jax.random.uniform(kw, (fan_in, fan_out), jnp.float32, -bound, bound)
        b = jax.random.uniform(kb, (1, fan_out), jnp.float32, -bound, bound)
        return w, b

    k1, k2, k3 = jax.random.split(key, 3)
    w1, b1 = linear(k1, in_features, h1)
    w2, b2 = linear(k2, h1, h2)
    wo_col, bo = linear(k3, h2, 1)
    return {"w1": w1, "b1": b1, "w2": w2, "b2": b2,
            "wo": wo_col.T,   # stored as a (1, H2) row for the lane-dense out layer
            "bo": bo}


def mlp_reference_f32(x_nchw, params):
    """Pure-f32 JAX reference of the module's forward pass."""
    x = x_nchw.reshape(x_nchw.shape[0], -1)
    h = jnp.tanh(x @ params["w1"] + params["b1"])
    h = jnp.tanh(h @ params["w2"] + params["b2"])
    return h @ params["wo"].T + params["bo"]


def mlp_reference_bf16(x_nchw, params):
    """Reference mirroring the kernel's mixed precision (bf16 operands, f32 accum)."""
    x = x_nchw.reshape(x_nchw.shape[0], -1).astype(jnp.bfloat16)
    w1 = params["w1"].astype(jnp.bfloat16)
    w2 = params["w2"].astype(jnp.bfloat16)
    wo = params["wo"].astype(jnp.bfloat16)
    h = jnp.tanh(jnp.dot(x, w1, preferred_element_type=jnp.float32) + params["b1"])
    h = jnp.tanh(jnp.dot(h.astype(jnp.bfloat16), w2,
                         preferred_element_type=jnp.float32) + params["b2"])
    o = jnp.dot(h.astype(jnp.bfloat16), wo.T,
                preferred_element_type=jnp.float32)
    return o + params["bo"]


if __name__ == "__main__":
    # Small shapes consistent with the module: in_channels=4, patch_size=16, batch=2.
    B, C, P = 2, 4, 16
    in_features = C * P * P  # 1024

    key = jax.random.PRNGKey(0)
    kx, kp = jax.random.split(key)
    x = jax.random.normal(kx, (B, C, P, P), dtype=jnp.float32)
    params = init_params(kp, in_features, cfg_name="2_hidden_layer")

    out = jax.block_until_ready(mlp_forward(x, params))
    assert out.shape == (B, 1)

    # Tight check against a reference that uses the same mixed precision.
    ref_bf16 = mlp_reference_bf16(x, params)
    assert jnp.allclose(out, ref_bf16, atol=1e-4, rtol=1e-4), (out, ref_bf16)

    # Loose sanity check against full-f32 math (bf16 MXU operands round x/weights).
    ref_f32 = mlp_reference_f32(x, params)
    assert jnp.allclose(out, ref_f32, atol=3e-2, rtol=3e-2), (out, ref_f32)

    print("KERNEL_OK")
</pallas_src>

<mosaic_0001>
module attributes {stable_mosaic.version = 11 : i64} {
  func.func @_mlp_kernel(%arg0: i32, %arg1: memref<8x1024xf32, #tpu.memory_space<vmem>>, %arg2: memref<1024x64xbf16, #tpu.memory_space<vmem>>, %arg3: memref<1x64xf32, #tpu.memory_space<vmem>>, %arg4: memref<64x32xbf16, #tpu.memory_space<vmem>>, %arg5: memref<1x32xf32, #tpu.memory_space<vmem>>, %arg6: memref<1x32xbf16, #tpu.memory_space<vmem>>, %arg7: memref<1x1xf32, #tpu.memory_space<vmem>>, %arg8: memref<1x8xf32, #tpu.memory_space<vmem>>) attributes {dimension_semantics = [#tpu.dimension_semantics<parallel>], iteration_bounds = array<i64: 1>, scalar_prefetch = 0 : i64, scratch_operands = 0 : i64, tpu.core_type = #tpu.core_type<tc>, window_params = [{transform_indices = @transform_0, window_bounds = array<i64: 8, 1024>}, {pipeline_mode = #tpu.pipeline_mode<synchronous>, transform_indices = @transform_1, window_bounds = array<i64: 1024, 64>}, {pipeline_mode = #tpu.pipeline_mode<synchronous>, transform_indices = @transform_2, window_bounds = array<i64: 1, 64>}, {pipeline_mode = #tpu.pipeline_mode<synchronous>, transform_indices = @transform_3, window_bounds = array<i64: 64, 32>}, {pipeline_mode = #tpu.pipeline_mode<synchronous>, transform_indices = @transform_4, window_bounds = array<i64: 1, 32>}, {pipeline_mode = #tpu.pipeline_mode<synchronous>, transform_indices = @transform_5, window_bounds = array<i64: 1, 32>}, {pipeline_mode = #tpu.pipeline_mode<synchronous>, transform_indices = @transform_6, window_bounds = array<i64: 1, 1>}, {transform_indices = @transform_7, window_bounds = array<i64: 1, 8>}]} {
    %c0 = arith.constant 0 : index
    %c0_0 = arith.constant 0 : index
    %0 = vector.load %arg1[%c0, %c0_0] : memref<8x1024xf32, #tpu.memory_space<vmem>>, vector<8x1024xf32>
    %1 = arith.truncf %0 : vector<8x1024xf32> to vector<8x1024xbf16>
    %c0_1 = arith.constant 0 : index
    %c0_2 = arith.constant 0 : index
    %2 = vector.load %arg2[%c0_1, %c0_2] : memref<1024x64xbf16, #tpu.memory_space<vmem>>, vector<1024x64xbf16>
    %cst = arith.constant dense<0.000000e+00> : vector<8x64xf32>
    %3 = tpu.matmul %1, %2, %cst {dimension_numbers = #tpu.dot_dimension_numbers<[1], [0], [0], [1], [0, 0, 1, 1], [], []>} : vector<8x1024xbf16>, vector<1024x64xbf16>, vector<8x64xf32> -> vector<8x64xf32>
    %c0_3 = arith.constant 0 : index
    %c0_4 = arith.constant 0 : index
    %4 = vector.load %arg3[%c0_3, %c0_4] : memref<1x64xf32, #tpu.memory_space<vmem>>, vector<1x64xf32>
    %5 = vector.broadcast %4 : vector<1x64xf32> to vector<8x64xf32>
    %6 = arith.addf %3, %5 : vector<8x64xf32>
    %7 = math.tanh %6 : vector<8x64xf32>
    %8 = arith.truncf %7 : vector<8x64xf32> to vector<8x64xbf16>
    %c0_5 = arith.constant 0 : index
    %c0_6 = arith.constant 0 : index
    %9 = vector.load %arg4[%c0_5, %c0_6] : memref<64x32xbf16, #tpu.memory_space<vmem>>, vector<64x32xbf16>
    %cst_7 = arith.constant dense<0.000000e+00> : vector<8x32xf32>
    %10 = tpu.matmul %8, %9, %cst_7 {dimension_numbers = #tpu.dot_dimension_numbers<[1], [0], [0], [1], [0, 0, 1, 1], [], []>} : vector<8x64xbf16>, vector<64x32xbf16>, vector<8x32xf32> -> vector<8x32xf32>
    %c0_8 = arith.constant 0 : index
    %c0_9 = arith.constant 0 : index
    %11 = vector.load %arg5[%c0_8, %c0_9] : memref<1x32xf32, #tpu.memory_space<vmem>>, vector<1x32xf32>
    %12 = vector.broadcast %11 : vector<1x32xf32> to vector<8x32xf32>
    %13 = arith.addf %10, %12 : vector<8x32xf32>
    %14 = math.tanh %13 : vector<8x32xf32>
    %c0_10 = arith.constant 0 : index
    %c0_11 = arith.constant 0 : index
    %15 = vector.load %arg6[%c0_10, %c0_11] : memref<1x32xbf16, #tpu.memory_space<vmem>>, vector<1x32xbf16>
    %16 = arith.truncf %14 : vector<8x32xf32> to vector<8x32xbf16>
    %cst_12 = arith.constant dense<0.000000e+00> : vector<1x8xf32>
    %17 = tpu.matmul %15, %16, %cst_12 {dimension_numbers = #tpu.dot_dimension_numbers<[1], [1], [0], [0], [0, 0, 1, 0], [], []>} : vector<1x32xbf16>, vector<8x32xbf16>, vector<1x8xf32> -> vector<1x8xf32>
    %c0_13 = arith.constant 0 : index
    %c0_14 = arith.constant 0 : index
    %18 = vector.load %arg7[%c0_13, %c0_14] : memref<1x1xf32, #tpu.memory_space<vmem>>, vector<1x1xf32>
    %19 = vector.broadcast %18 : vector<1x1xf32> to vector<1x8xf32>
    %20 = arith.addf %17, %19 : vector<1x8xf32>
    %c0_15 = arith.constant 0 : index
    %c0_16 = arith.constant 0 : index
    %21 = vector.load %arg8[%c0_15, %c0_16] : memref<1x8xf32, #tpu.memory_space<vmem>>, vector<1x8xf32>
    tpu.vector_store %arg8[%c0_15, %c0_16], %20 {strides = array<i32>} : memref<1x8xf32, #tpu.memory_space<vmem>>, vector<1x8xf32>,
    return
  }
  func.func @transform_0(%arg0: i32) -> (i32, i32) {
    %c0_i32 = arith.constant 0 : i32
    %c0_i32_0 = arith.constant 0 : i32
    return %arg0, %c0_i32 : i32, i32
  }
  func.func @transform_1(%arg0: i32) -> (i32, i32) {
    %c0_i32 = arith.constant 0 : i32
    %c0_i32_0 = arith.constant 0 : i32
    %c0_i32_1 = arith.constant 0 : i32
    return %c0_i32, %c0_i32_0 : i32, i32
  }
  func.func @transform_2(%arg0: i32) -> (i32, i32) {
    %c0_i32 = arith.constant 0 : i32
    %c0_i32_0 = arith.constant 0 : i32
    %c0_i32_1 = arith.constant 0 : i32
    return %c0_i32, %c0_i32_0 : i32, i32
  }
  func.func @transform_3(%arg0: i32) -> (i32, i32) {
    %c0_i32 = arith.constant 0 : i32
    %c0_i32_0 = arith.constant 0 : i32
    %c0_i32_1 = arith.constant 0 : i32
    return %c0_i32, %c0_i32_0 : i32, i32
  }
  func.func @transform_4(%arg0: i32) -> (i32, i32) {
    %c0_i32 = arith.constant 0 : i32
    %c0_i32_0 = arith.constant 0 : i32
    %c0_i32_1 = arith.constant 0 : i32
    return %c0_i32, %c0_i32_0 : i32, i32
  }
  func.func @transform_5(%arg0: i32) -> (i32, i32) {
    %c0_i32 = arith.constant 0 : i32
    %c0_i32_0 = arith.constant 0 : i32
    %c0_i32_1 = arith.constant 0 : i32
    return %c0_i32, %c0_i32_0 : i32, i32
  }
  func.func @transform_6(%arg0: i32) -> (i32, i32) {
    %c0_i32 = arith.constant 0 : i32
    %c0_i32_0 = arith.constant 0 : i32
    %c0_i32_1 = arith.constant 0 : i32
    return %c0_i32, %c0_i32_0 : i32, i32
  }
  func.func @transform_7(%arg0: i32) -> (i32, i32) {
    %c0_i32 = arith.constant 0 : i32
    %c0_i32_0 = arith.constant 0 : i32
    return %c0_i32, %arg0 : i32, i32
  }
}

</mosaic_0001>

<bundles_post_ra>
// kernel: mlp_forward.1
= control target key start
LH: loop header
LB: loop body
LE: loop exit
PB: predicated region body
PF: predicated region fallthrough
CT: control target
= control target key end

     0   :  { %vm1137_vm0 = vmmov 0   ;;  %vm765_vm1 = vcmask 523264   ;;  %vm822_vm2 = vcmask 261120   ;;  %vm869_vm3 = vcmask 57344   ;;  %s1422_s1 = inlined_call_operand.vmem [shape: bf16[1024,64], index: 1, kind: input, shape index: {}]   ;;  %s1423_s0 = inlined_call_operand.vmem [shape: f32[8,1024], index: 0, kind: input, shape index: {}]   ;;  %s1424_s3 = inlined_call_operand.vmem [shape: bf16[64,32], index: 3, kind: input, shape index: {}]   ;;  %s1425_s2 = inlined_call_operand.vmem [shape: f32[1,64], index: 2, kind: input, shape index: {}]   ;;  %s1426_s6 = inlined_call_operand.<no memory space> [shape: f32[1,1], index: 6, kind: input, shape index: {}]   ;;  %s1427_s4 = inlined_call_operand.vmem [shape: f32[1,32], index: 4, kind: input, shape index: {}]   ;;  %s1428_s5 = inlined_call_operand.vmem [shape: bf16[1,32], index: 5, kind: input, shape index: {}]   ;;  %s1429_s7 = inlined_call_operand.vmem [shape: f32[1,8], index: 7, kind: output, shape index: {}]  }
   0x1   :  { %v1064_v0 = vld [vmem:[%s1422_s1 + $0x78] sm:$0xff]   ;;  %v1068_v4 = vld [vmem:[%s1422_s1 + $0x70] sm:$0xff]   ;;  %v1072_v8 = vld [vmem:[%s1422_s1 + $0x68] sm:$0xff]  }
   0x2   :  { %v1065_v1 = vld [vmem:[%s1422_s1 + $0xf8] sm:$0xff]   ;;  %947 = vmatprep.subr.bf16.mxu0 %v1064_v0  ;;  %v1069_v5 = vld [vmem:[%s1422_s1 + $0xf0] sm:$0xff]   ;;  %v1073_v9 = vld [vmem:[%s1422_s1 + $0xe8] sm:$0xff]  }
   0x3   :  { %v1066_v2 = vld [vmem:[%s1422_s1 + $0x38] sm:$0xff]   ;;  %969 = vmatprep.subr.bf16.mxu1 %v1065_v1  ;;  %v1070_v6 = vld [vmem:[%s1422_s1 + $0x30] sm:$0xff]   ;;  %v1074_v10 = vld [vmem:[%s1422_s1 + $0x28] sm:$0xff]  }
   0x4   :  { %v1067_v3 = vld [vmem:[%s1422_s1 + $0xb8] sm:$0xff]   ;;  %948 = vmatpush3.bf16.msra.mxu0 %v1066_v2  ;;  %v1071_v7 = vld [vmem:[%s1422_s1 + $0xb0] sm:$0xff]   ;;  %v1075_v11 = vld [vmem:[%s1422_s1 + $0xa8] sm:$0xff]  }
   0x5   :  { %970 = vmatpush3.bf16.msra.mxu1 %v1067_v3  ;;  %949 = vmatprep.subr.bf16.mxu0 %v1068_v4  ;;  %v1076_v12 = vld [vmem:[%s1422_s1 + $0x60] sm:$0xff]   ;;  %v1080_v16 = vld [vmem:[%s1422_s1 + $0x58] sm:$0xff]   ;;  %v1084_v20 = vld [vmem:[%s1422_s1 + $0x50] sm:$0xff]  }
   0x6   :  { %971 = vmatprep.subr.bf16.mxu1 %v1069_v5  ;;  %v1077_v13 = vld [vmem:[%s1422_s1 + $0xe0] sm:$0xff]   ;;  %v1081_v17 = vld [vmem:[%s1422_s1 + $0xd8] sm:$0xff]   ;;  %v1085_v21 = vld [vmem:[%s1422_s1 + $0xd0] sm:$0xff]  }
   0x7   :  { %v1078_v14 = vld [vmem:[%s1422_s1 + $0x20] sm:$0xff]   ;;  %v1082_v18 = vld [vmem:[%s1422_s1 + $0x18] sm:$0xff]   ;;  %v1086_v22 = vld [vmem:[%s1422_s1 + $0x10] sm:$0xff]  }
   0x8   :  { %950 = vmatpush3.bf16.msra.mxu0 %v1070_v6  ;;  %v1079_v15 = vld [vmem:[%s1422_s1 + $0xa0] sm:$0xff]   ;;  %v1083_v19 = vld [vmem:[%s1422_s1 + $0x98] sm:$0xff]   ;;  %v1087_v23 = vld [vmem:[%s1422_s1 + $0x90] sm:$0xff]  }
   0x9   :  { %972 = vmatpush3.bf16.msra.mxu1 %v1071_v7  ;;  %951 = vmatprep.subr.bf16.mxu0 %v1072_v8  ;;  %v1088_v24 = vld [vmem:[%s1422_s1 + $0x48] sm:$0xff]   ;;  %v1092_v28 = vld [vmem:[%s1422_s1 + $0x40] sm:$0xff]   ;;  %v32_v33 = vld [vmem:[%s1423_s0 + $0x18] sm:$0xff] }
   0xa   :  { %973 = vmatprep.subr.bf16.mxu1 %v1073_v9  ;;  %v1089_v25 = vld [vmem:[%s1422_s1 + $0xc8] sm:$0xff]   ;;  %v1093_v29 = vld [vmem:[%s1422_s1 + $0xc0] sm:$0xff]   ;;  %v40_v36 = vpack.c.bf16 %v32_v33, %v32_v33  ;;  %v31_v38 = vld [vmem:[%s1423_s0 + $0x10] sm:$0xff] }
   0xb   :  { %v1090_v26 = vld [vmem:[%s1422_s1 + $0x8] sm:$0xff]   ;;  %v1094_v30 = vld [vmem:[%s1422_s1] sm:$0xff]   ;;  %v39_v39 = vpack.c.bf16 %v31_v38, %v31_v38  ;;  %v1096_v40 = vld [vmem:[%s1422_s1 + $0x178] sm:$0xff]  }
   0xc   :  { %952 = vmatpush3.bf16.msra.mxu0 %v1074_v10  ;;  %v1091_v27 = vld [vmem:[%s1422_s1 + $0x88] sm:$0xff]   ;;  %v1095_v31 = vld [vmem:[%s1422_s1 + $0x80] sm:$0xff]   ;;  %636 = vmatprep.mubr.bf16.mxu1 %v40_v36  ;;  %v1097_v41 = vld [vmem:[%s1422_s1 + $0x1f8] sm:$0xff]  }
   0xd   :  { %974 = vmatpush3.bf16.msra.mxu1 %v1075_v11  ;;  %953 = vmatprep.subr.bf16.mxu0 %v1076_v12  ;;  %v30_v32 = vld [vmem:[%s1423_s0 + $0x8] sm:$0xff]  ;;  %v29_v34 = vld [vmem:[%s1423_s0] sm:$0xff]  ;;  %v1098_v42 = vld [vmem:[%s1422_s1 + $0x138] sm:$0xff]  }
   0xe   :  { %975 = vmatprep.subr.bf16.mxu1 %v1077_v13  ;;  %v38_v35 = vpack.c.bf16 %v30_v32, %v30_v32  ;;  %v37_v37 = vpack.c.bf16 %v29_v34, %v29_v34  ;;  %v1099_v43 = vld [vmem:[%s1422_s1 + $0x1b8] sm:$0xff]   ;;  %v1100_v44 = vld [vmem:[%s1422_s1 + $0x170] sm:$0xff]   ;;  %v1104_v48 = vld [vmem:[%s1422_s1 + $0x168] sm:$0xff]  }
   0xf   :  { %v1101_v45 = vld [vmem:[%s1422_s1 + $0x1f0] sm:$0xff]   ;;  %v1105_v49 = vld [vmem:[%s1422_s1 + $0x1e8] sm:$0xff]   ;;  %v1108_v52 = vld [vmem:[%s1422_s1 + $0x160] sm:$0xff]  }
  0x10   :  { %954 = vmatpush3.bf16.msra.mxu0 %v1078_v14  ;;  %596 = vmatprep.mubr.bf16.mxu0 %v38_v35  ;;  %v1102_v46 = vld [vmem:[%s1422_s1 + $0x130] sm:$0xff]   ;;  %v1106_v50 = vld [vmem:[%s1422_s1 + $0x128] sm:$0xff]   ;;  %v1109_v53 = vld [vmem:[%s1422_s1 + $0x1e0] sm:$0xff]  }
  0x11   :  { %976 = vmatpush3.bf16.msra.mxu1 %v1079_v15  ;;  %955 = vmatprep.subr.bf16.mxu0 %v1080_v16  ;;  %v1103_v47 = vld [vmem:[%s1422_s1 + $0x1b0] sm:$0xff]   ;;  %v1107_v51 = vld [vmem:[%s1422_s1 + $0x1a8] sm:$0xff]   ;;  %v1110_v54 = vld [vmem:[%s1422_s1 + $0x120] sm:$0xff]  }
  0x12   :  { %977 = vmatprep.subr.bf16.mxu1 %v1081_v17  ;;  %v1111_v55 = vld [vmem:[%s1422_s1 + $0x1a0] sm:$0xff]   ;;  %v1112_v56 = vld [vmem:[%s1422_s1 + $0x158] sm:$0xff]   ;;  %v1116_v60 = vld [vmem:[%s1422_s1 + $0x150] sm:$0xff]   ;;  %v1136_v17 = vmov 0.0  }
  0x13   :  { %v1113_v57 = vld [vmem:[%s1422_s1 + $0x1d8] sm:$0xff]   ;;  %v1117_v61 = vld [vmem:[%s1422_s1 + $0x1d0] sm:$0xff]   ;;  %v1120_v0 = vld [vmem:[%s1422_s1 + $0x148] sm:$0xff]  }
  0x14   :  { %956 = vmatpush3.bf16.msra.mxu0 %v1082_v18  ;;  %v1114_v58 = vld [vmem:[%s1422_s1 + $0x118] sm:$0xff]   ;;  %v1118_v62 = vld [vmem:[%s1422_s1 + $0x110] sm:$0xff]   ;;  %v1121_v1 = vld [vmem:[%s1422_s1 + $0x1c8] sm:$0xff]  }
  0x15   :  { %978 = vmatpush3.bf16.msra.mxu1 %v1083_v19  ;;  %957 = vmatprep.subr.bf16.mxu0 %v1084_v20  ;;  %v1115_v59 = vld [vmem:[%s1422_s1 + $0x198] sm:$0xff]   ;;  %v1119_v63 = vld [vmem:[%s1422_s1 + $0x190] sm:$0xff]   ;;  %v1122_v2 = vld [vmem:[%s1422_s1 + $0x108] sm:$0xff]  }
  0x16   :  { %979 = vmatprep.subr.bf16.mxu1 %v1085_v21  ;;  %v1123_v3 = vld [vmem:[%s1422_s1 + $0x188] sm:$0xff]   ;;  %v1124_v4 = vld [vmem:[%s1422_s1 + $0x140] sm:$0xff]   ;;  %v36_v9 = vld [vmem:[%s1423_s0 + $0x38] sm:$0xff] }
  0x17   :  { %v1125_v5 = vld [vmem:[%s1422_s1 + $0x1c0] sm:$0xff]   ;;  %v34_v8 = vld [vmem:[%s1423_s0 + $0x28] sm:$0xff]  ;;  %v44_v11 = vpack.c.bf16 %v36_v9, %v36_v9  ;;  %v35_v13 = vld [vmem:[%s1423_s0 + $0x30] sm:$0xff] }
  0x18   :  { %958 = vmatpush3.bf16.msra.mxu0 %v1086_v22  ;;  %v1126_v6 = vld [vmem:[%s1422_s1 + $0x100] sm:$0xff]   ;;  %v42_v10 = vpack.c.bf16 %v34_v8, %v34_v8  ;;  %v43_v15 = vpack.c.bf16 %v35_v13, %v35_v13  ;;  %v1128_v16 = vld [vmem:[%s1424_s3 + $0x18] sm:$0xff]   ;;  %v1129_v18 = vld [vmem:[%s1424_s3 + $0x10] sm:$0xff]  }
  0x19   :  { %980 = vmatpush3.bf16.msra.mxu1 %v1087_v23  ;;  %959 = vmatprep.subr.bf16.mxu0 %v1088_v24  ;;  %v1127_v7 = vld [vmem:[%s1422_s1 + $0x180] sm:$0xff]   ;;  %v1130_v19 = vld [vmem:[%s1424_s3 + $0x8] sm:$0xff]  }
  0x1a   :  { %981 = vmatprep.subr.bf16.mxu1 %v1089_v25  ;;  %v33_v12 = vld [vmem:[%s1423_s0 + $0x20] sm:$0xff] }
  0x1b   :  { %v41_v14 = vpack.c.bf16 %v33_v12, %v33_v12  ;;  %v1131_v20 = vld [vmem:[%s1424_s3] sm:$0xff]  }
  0x1c   :  { %960 = vmatpush3.bf16.msra.mxu0 %v1090_v26 }
  0x1d   :  { %982 = vmatpush3.bf16.msra.mxu1 %v1091_v27  ;;  %961 = vmatprep.subr.bf16.mxu0 %v1092_v28 }
  0x1e   :  { %983 = vmatprep.subr.bf16.mxu1 %v1093_v29 }
  0x20   :  { %962 = vmatpush3.bf16.msra.mxu0 %v1094_v30  ;;  %v875_v30 = vld [vmem:[%s1425_s2] ss:$0 sm:$0xff] }
  0x21   :  { %984 = vmatpush3.bf16.msra.mxu1 %v1095_v31  ;;  %991 = vmatprep.subr.bf16.mxu0 %v1096_v40 }
  0x22   :  { %1013 = vmatprep.subr.bf16.mxu1 %v1097_v41 }
  0x23   :  { %597 = vmatmul.mubr.bf16.vlgmr.msra.gmra.mxu0 %v37_v37 }
  0x24   :  { %637 = vmatmul.mubr.bf16.vlgmr.msra.gmra.mxu1 %v39_v39  ;;  %992 = vmatpush3.bf16.msra.mxu0 %v1098_v42 }
  0x25   :  { %1014 = vmatpush3.bf16.msra.mxu1 %v1099_v43  ;;  %993 = vmatprep.subr.bf16.mxu0 %v1100_v44 }
  0x26   :  { %1015 = vmatprep.subr.bf16.mxu1 %v1101_v45  ;;  %676 = vmatprep.mubr.bf16.mxu0 %v42_v10 }
  0x27   :  { %716 = vmatprep.mubr.bf16.mxu1 %v44_v11 }
  0x28   :  { %994 = vmatpush3.bf16.msra.mxu0 %v1102_v46 }
  0x29   :  { %1016 = vmatpush3.bf16.msra.mxu1 %v1103_v47  ;;  %995 = vmatprep.subr.bf16.mxu0 %v1104_v48  ;;  %v1138_v48 = vmov 0  }
  0x2a   :  { %1017 = vmatprep.subr.bf16.mxu1 %v1105_v49  ;;  %1063 = vset.pattern.permute.xlu0 %v1138_v48  ;;  %v12_v49 = vstv %s1426_s6 }
  0x2b   :  { %13 = vst [vmem:[#allocation2] sm:$0x1] %v12_v49 }
  0x2c   :  { %996 = vmatpush3.bf16.msra.mxu0 %v1106_v50 }
  0x2d   :  { %1018 = vmatpush3.bf16.msra.mxu1 %v1107_v51  ;;  %997 = vmatprep.subr.bf16.mxu0 %v1108_v52  ;;  %v940_v51 = vld [vmem:[%s1427_s4] ss:$0 sm:$0xff] }
  0x2e   :  { %1019 = vmatprep.subr.bf16.mxu1 %v1109_v53 }
  0x30   :  { %998 = vmatpush3.bf16.msra.mxu0 %v1110_v54 }
  0x31   :  { %1020 = vmatpush3.bf16.msra.mxu1 %v1111_v55  ;;  %999 = vmatprep.subr.bf16.mxu0 %v1112_v56 }
  0x32   :  { %1021 = vmatprep.subr.bf16.mxu1 %v1113_v57  ;;  %v812_v50 = vld [vmem:[#allocation2] sm:$0x1] }
  0x33   :  { %815 = vperm.xlu0 %1063, %v812_v50  }
  0x34   :  { %1000 = vmatpush3.bf16.msra.mxu0 %v1114_v58 }
  0x35   :  { %1022 = vmatpush3.bf16.msra.mxu1 %v1115_v59  ;;  %1001 = vmatprep.subr.bf16.mxu0 %v1116_v60  ;;  %v810_v60 = vld [vmem:[%s1428_s5] sm:$0x1] }
  0x36   :  { %1023 = vmatprep.subr.bf16.mxu1 %v1117_v61  ;;  %v818_v61 = vlaneseq }
  0x38   :  { %1002 = vmatpush3.bf16.msra.mxu0 %v1118_v62  ;;  %v819_v62 = vshrl.u32 %v818_v61, 7 }
  0x39   :  { %1024 = vmatpush3.bf16.msra.mxu1 %v1119_v63  ;;  %1003 = vmatprep.subr.bf16.mxu0 %v1120_v0 }
  0x3a   :  { %1025 = vmatprep.subr.bf16.mxu1 %v1121_v1  ;;  %v820_v63 = vsub.s32 0, %v819_v62 }
  0x3c   :  { %1004 = vmatpush3.bf16.msra.mxu0 %v1122_v2 }
  0x3d   :  { %1026 = vmatpush3.bf16.msra.mxu1 %v1123_v3  ;;  %1005 = vmatprep.subr.bf16.mxu0 %v1124_v4 }
  0x3e   :  { %1027 = vmatprep.subr.bf16.mxu1 %v1125_v5 }
  0x40   :  { %1006 = vmatpush3.bf16.msra.mxu0 %v1126_v6 }
  0x41   :  { %1028 = vmatpush3.bf16.msra.mxu1 %v1127_v7  ;;  %1042 = vmatprep.subr.bf16.mxu0 %v1136_v17 }
  0x42   :  { %1054 = vmatprep.subr.bf16.mxu1 %v1136_v17 }
  0x43   :  { %677 = vmatmul.mubr.bf16.vlgmr.msra.gmra.mxu0 %v41_v14 }
  0x44   :  { %717 = vmatmul.mubr.bf16.vlgmr.msra.gmra.mxu1 %v43_v15  ;;  %1043 = vmatpush3.bf16.msra.mxu0 %v1128_v16 }
  0x45   :  { %1044 = vmatprep.subr.bf16.mxu0 %v1136_v17  ;;  %1050 = vmatprep.mubr.msk.bf16.mxu0 %vm1137_vm0, %v1136_v17 }
  0x46   :  { %1056 = vmatprep.mubr.msk.bf16.mxu1 %vm1137_vm0, %v1136_v17 }
  0x48   :  { %1045 = vmatpush3.bf16.msra.mxu0 %v1129_v18 }
  0x49   :  { %1046 = vmatprep.subr.bf16.mxu0 %v1136_v17 }
  0x4c   :  { %1047 = vmatpush3.bf16.msra.mxu0 %v1130_v19 }
  0x4d   :  { %1048 = vmatprep.subr.bf16.mxu0 %v1136_v17 }
  0x50   :  { %1049 = vmatpush3.bf16.msra.mxu0 %v1131_v20 }
  0xae   :  { %v816_v0 = vpop.permute.xlu0 %815 }
  0xaf   :  { %v821_v1 = vrot.slane %v816_v0, %v820_v63 }
  0xe3   :  { %v963_v21 = vpop.f32.mrf.mxu0 }
  0xe4   :  { %v985_v22 = vpop.f32.mrf.mxu1 }
  0xe5   :  { %v964_v23 = vpop.f32.mrf.mxu0 }
  0xe6   :  { %v986_v24 = vpop.f32.mrf.mxu1  ;;  %v965_v29 = vadd.f32 %v964_v23, %v963_v21 }
  0xe7   :  { %v966_v25 = vpop.f32.mrf.mxu0  ;;  %v987_v32 = vadd.f32 %v986_v24, %v985_v22 }
  0xe8   :  { %v988_v26 = vpop.f32.mrf.mxu1  ;;  %v599_v31 = vadd.f32 %v965_v29, %v875_v30 }
  0xe9   :  { %v967_v27 = vpop.f32.mrf.mxu0 }
  0xea   :  { %v989_v28 = vpop.f32.mrf.mxu1  ;;  %v639_v36 = vadd.f32 %v987_v32, %v599_v31 }
 0x103   :  { %v1007_v33 = vpop.f32.mrf.mxu0 }
 0x104   :  { %v1029_v34 = vpop.f32.mrf.mxu1 }
 0x105   :  { %v1008_v35 = vpop.f32.mrf.mxu0 }
 0x106   :  { %v1009_v37 = vadd.f32 %v1008_v35, %v1007_v33  ;;  %v1030_v38 = vpop.f32.mrf.mxu1 }
 0x107   :  { %v1010_v39 = vpop.f32.mrf.mxu0  ;;  %v1031_v41 = vadd.f32 %v1030_v38, %v1029_v34 }
 0x108   :  { %v679_v40 = vadd.f32 %v1009_v37, %v639_v36  ;;  %v1032_v42 = vpop.f32.mrf.mxu1 }
 0x109   :  { %v1011_v43 = vpop.f32.mrf.mxu0 }
 0x10a   :  { %v719_v44 = vadd.f32 %v1031_v41, %v679_v40  ;;  %v1033_v45 = vpop.f32.mrf.mxu1 }
 0x10c   :  { %1132 = vtanh.f32 %v719_v44 }
 0x119   :  { %v1133_v46 = vpop.eup %1132 }
 0x11a   :  { %v725_v47 = vpack.c.bf16 %v1133_v46, %v1133_v46 }
 0x11c   :  { %1051 = vmatmul.mubr.msk.bf16.vlgmr.msra.gmra.mxu0 %vm765_vm1, %v725_v47 }
 0x1dc   :  { %v803_v52 = vpop.f32.mrf.mxu0 }
 0x1dd   :  { %v804_v53 = vadd.f32 %v940_v51, %v803_v52 }
 0x1de   :  { %v1052_v54 = vpop.f32.mrf.mxu0 }
 0x1df   :  { %1134 = vtanh.f32 %v804_v53 }
 0x1e0   :  { %v806_v55 = vpop.f32.mrf.mxu0 }
 0x1e2   :  { %v1053_v56 = vpop.f32.mrf.mxu0 }
 0x1ec   :  { %v1135_v57 = vpop.eup %1134 }
 0x1ed   :  { %v811_v58 = vpack.c.bf16 %v1135_v57, %v1135_v57 }
 0x1ef   :  { %v827_v59 = vsel %vm822_vm2, %v811_v58, 0 }
 0x1f0   :  { %1055 = vmatpush3.bf16.xpose.msra.mxu1 %v827_v59 }
 0x1f7   :  { %1057 = vmatmul.mubr.msk.bf16.vlgmr.msra.gmra.mxu1 %vm822_vm2, %v810_v60 }
 0x2b7   :  { %v863_v2 = vpop.f32.mrf.mxu1 }
 0x2b8   :  { %v864_v3 = vadd.f32 %v863_v2, %v821_v1 }
 0x2b9   :  { %v1058_v4 = vpop.f32.mrf.mxu1 }
 0x2ba   :  { %870 = vst.msk [vmem:[%s1429_s7] sm:$0x1] %vm869_vm3, %v864_v3 }
 0x2bb   :  { %v866_v5 = vpop.f32.mrf.mxu1 }
 0x2bd   :  { %v1059_v6 = vpop.f32.mrf.mxu1 }

</bundles_post_ra>
